<compile_context>
chip_gen: v7x
topology: tpu7x:2x2x1
jax: 0.10.0
libtpu: 0.0.40
codegen_flags: <defaults>
</compile_context>

<pallas_src>
import functools

import jax
import jax.numpy as jnp
from jax.experimental import pallas as pl
from jax.experimental.pallas import tpu as pltpu


def _round_up(v, m):
    return ((v + m - 1) // m) * m


def _vmem_capacity_bytes():
    """Physical VMEM per TensorCore (64 MiB on v7x, 128 MiB on v5e/v6e)."""
    try:
        return int(pltpu.get_tpu_info().vmem_capacity_bytes)
    except Exception:
        return 128 * 1024 * 1024


def _pow(p, gamma):
    """(1 - softmax)**gamma.  Integer gamma stays on the VPU (exp-by-squaring);
    fractional gamma uses jnp.power (exp+log on the single EUP slot)."""
    g = float(gamma)
    if g == int(g) and 0 <= int(g) <= 16:
        gi = int(g)
        if gi == 0:
            return jnp.ones_like(p)
        result = None
        base = p
        while gi:
            if gi & 1:
                result = base if result is None else result * base
            gi >>= 1
            if gi:
                base = base * base
        return result
    return jnp.power(p, jnp.float32(g))


def _tile_loss(x, t, a, gamma):
    """Focal loss for one (tile_n, C) tile; x, t already float32."""
    m = jnp.max(x, axis=-1, keepdims=True)
    z = x - m
    e = jnp.exp(z)
    s = jnp.sum(e, axis=-1, keepdims=True)
    soft = e * pl.reciprocal(s, approx=False)     # softmax(x, dim=1)
    log_soft = z - jnp.log(s)                     # log_softmax(x, dim=1)
    loss = (-t) * _pow(1.0 - soft, gamma) * log_soft
    if a is not None:
        # t*a + (1-t)*(1-a) == (1-a) + t*(2a-1)  (fused form, fewer VALU ops)
        loss = ((1.0 - a) + t * (2.0 * a - 1.0)) * loss
    return loss


def _build_kernel(*, gamma, use_alpha, use_labels, want_full, n_rows, tile_n):
    """Build a kernel with a fixed ref signature for the chosen configuration."""

    def kernel(*refs):
        idx = 0
        x_ref = refs[idx]; idx += 1
        t_ref = refs[idx]; idx += 1
        a_ref = None
        if use_alpha:
            a_ref = refs[idx]; idx += 1
        out_ref = refs[idx]

        x = x_ref[...].astype(jnp.float32)                      # (tile_n, C)
        if use_labels:
            # Build the one-hot target in-register from the (tile_n, 1) label column.
            lbl = t_ref[...].astype(jnp.int32)                  # (tile_n, 1)
            cls = jax.lax.broadcasted_iota(jnp.int32, x.shape, 1)
            t = (cls == lbl).astype(jnp.float32)
        else:
            t = t_ref[...].astype(jnp.float32)
        a = a_ref[...].astype(jnp.float32) if use_alpha else None

        loss = _tile_loss(x, t, a, gamma)

        if want_full:
            # Ragged last block: Pallas discards the out-of-bounds rows on writeback.
            out_ref[...] = loss.astype(out_ref.dtype)
        else:
            if n_rows % tile_n != 0:
                # Mask garbage rows of the ragged last block BEFORE the axis-0 sum.
                row = pl.program_id(0) * tile_n + jax.lax.broadcasted_iota(
                    jnp.int32, (loss.shape[0], 1), 0)
                loss = jnp.where(row < n_rows, loss, 0.0)
            out_ref[...] = jnp.sum(loss, axis=0, keepdims=True)[None]  # (1, 1, C)

    return kernel


def focal_loss(x, target, *, gamma=2, alpha=None, reduction="mean", tile_rows=None):
    """Pallas implementation of FocalLoss.forward for 2-D (N, C) logits.

    `target` is either a dense (N, C) soft/one-hot target (matching the PyTorch
    module) or a 1-D integer label vector of length N (hard-label fast path:
    halves HBM input traffic, the one-hot is built in-register).
    """
    assert x.ndim == 2
    n, c = x.shape

    use_labels = (target.ndim == 1) and jnp.issubdtype(target.dtype, jnp.integer)
    if not use_labels:
        assert target.shape == x.shape, "dense target must match x"

    # Mirror the PyTorch __init__ handling of alpha.  NOTE: a scalar float/int alpha
    # builds a length-2 [alpha, 1-alpha] vector (like the module), which only
    # broadcasts against the class axis when C == 2.
    if isinstance(alpha, (float, int)) and not isinstance(alpha, bool):
        alpha_arr = jnp.array([alpha, 1.0 - alpha], dtype=jnp.float32)
    elif isinstance(alpha, (list, tuple)):
        alpha_arr = jnp.array(alpha, dtype=jnp.float32)
    elif alpha is None:
        alpha_arr = None
    else:
        alpha_arr = jnp.asarray(alpha, dtype=jnp.float32)
    use_alpha = alpha_arr is not None
    if use_alpha and alpha_arr.shape[-1] != c:
        raise ValueError(
            f"alpha (len {alpha_arr.shape[-1]}) must broadcast against the class "
            f"axis (C={c}); scalar alpha implies C==2 as in the PyTorch module")

    want_full = reduction not in ("mean", "sum")

    # ---- generation-aware VMEM budget & tile sizing ---------------------------
    vmem_cap = _vmem_capacity_bytes()                       # 64 MiB v7x, 128 MiB v5e/v6e
    vmem_limit = min(int(vmem_cap * 0.7), 96 * 1024 * 1024)
    tile_budget = int(vmem_limit * 0.75)                    # headroom for mosaic scratch

    x_item = x.dtype.itemsize
    t_item = 4 if use_labels else target.dtype.itemsize
    out_item = x.dtype.itemsize if want_full else 0
    io_per_row = c * x_item + (4 if use_labels else c * t_item) + c * out_item
    interm_per_row = 6 * c * 4                               # f32 temporaries in-kernel
    bytes_per_row = 2 * io_per_row + interm_per_row          # x2: double-buffered I/O

    if tile_rows is not None:
        tile_n = _round_up(max(int(tile_rows), 1), 8)
    else:
        tile_n = max(8, (tile_budget // bytes_per_row) // 8 * 8)
        tile_n = min(tile_n, _round_up(n, 8))
        # Keep both v7x TensorCores fed: at least 2 grid steps when N allows.
        if n >= 16 and pl.cdiv(n, tile_n) < 2:
            tile_n = _round_up(pl.cdiv(n, 2), 8)
    num_tiles = pl.cdiv(n, tile_n)

    # ---- inputs (no padding, no wrapper-side casts of the big arrays) ---------
    in_arrays = [x]
    in_specs = [pl.BlockSpec((tile_n, c), lambda i: (i, 0))]
    if use_labels:
        in_arrays.append(target.astype(jnp.int32).reshape(n, 1))
        in_specs.append(pl.BlockSpec((tile_n, 1), lambda i: (i, 0)))
    else:
        in_arrays.append(target)
        in_specs.append(pl.BlockSpec((tile_n, c), lambda i: (i, 0)))
    if use_alpha:
        in_arrays.append(alpha_arr.reshape(1, c).astype(jnp.float32))
        # grid-invariant block -> stays resident in VMEM across all tiles
        in_specs.append(pl.BlockSpec((1, c), lambda i: (0, 0)))

    compiler_params = pltpu.CompilerParams(
        dimension_semantics=("parallel",),
        vmem_limit_bytes=vmem_limit,
    )

    kernel = _build_kernel(gamma=gamma, use_alpha=use_alpha, use_labels=use_labels,
                           want_full=want_full, n_rows=n, tile_n=tile_n)

    if not want_full:
        # mean / sum: only per-tile, per-class partial sums ever touch HBM.
        partials = pl.pallas_call(
            kernel,
            grid=(num_tiles,),
            in_specs=in_specs,
            out_specs=pl.BlockSpec((1, 1, c), lambda i: (i, 0, 0)),
            out_shape=jax.ShapeDtypeStruct((num_tiles, 1, c), jnp.float32),
            compiler_params=compiler_params,
        )(*in_arrays)
        total = jnp.sum(partials)
        if reduction == "mean":
            return total / jnp.float32(n)
        return total

    # reduction == 'none': materialize the full (N, C) loss (ragged blocks are
    # write-masked by Pallas, so no padding and no post-slice is needed).
    return pl.pallas_call(
        kernel,
        grid=(num_tiles,),
        in_specs=in_specs,
        out_specs=pl.BlockSpec((tile_n, c), lambda i: (i, 0)),
        out_shape=jax.ShapeDtypeStruct((n, c), x.dtype),
        compiler_params=compiler_params,
    )(*in_arrays)


def _focal_loss_ref(x, target, *, gamma=2, alpha=None, reduction="mean"):
    """Pure-JAX reference mirroring the PyTorch module (dense target)."""
    soft = jax.nn.softmax(x.astype(jnp.float32), axis=1)
    log_soft = jax.nn.log_softmax(x.astype(jnp.float32), axis=1)
    t = target.astype(jnp.float32)
    loss = -t * (1.0 - soft) ** gamma * log_soft
    if alpha is not None:
        a = jnp.asarray(alpha, dtype=jnp.float32)
        loss = (t * a + (1.0 - t) * (1.0 - a)) * loss
    if reduction == "mean":
        return jnp.mean(jnp.sum(loss, axis=-1))
    elif reduction == "sum":
        return jnp.sum(jnp.sum(loss, axis=-1))
    return loss


if __name__ == "__main__":
    key = jax.random.PRNGKey(0)
    k_x, k_lbl, k_x2, k_lbl2 = jax.random.split(key, 4)

    # ---- small config matching the module's expected use: (N, C) logits ------
    N, C = 8, 16
    x = jax.random.normal(k_x, (N, C), dtype=jnp.float32)
    labels = jax.random.randint(k_lbl, (N,), 0, C)
    target = jax.nn.one_hot(labels, C, dtype=jnp.float32)
    alpha_list = [float(v) for v in jnp.linspace(0.1, 0.9, C)]

    # gamma=2, alpha=None, reduction='mean'
    out = focal_loss(x, target, gamma=2, alpha=None, reduction="mean")
    jax.block_until_ready(out)
    ref = _focal_loss_ref(x, target, gamma=2, alpha=None, reduction="mean")
    assert jnp.allclose(out, ref, atol=1e-5, rtol=1e-5)

    # alpha-weighted, reduction='mean'
    out = focal_loss(x, target, gamma=2, alpha=alpha_list, reduction="mean")
    jax.block_until_ready(out)
    ref = _focal_loss_ref(x, target, gamma=2, alpha=jnp.array(alpha_list), reduction="mean")
    assert jnp.allclose(out, ref, atol=1e-5, rtol=1e-5)

    # hard-label fast path (one-hot built in-kernel), reduction='mean'
    out = focal_loss(x, labels, gamma=2, alpha=alpha_list, reduction="mean")
    jax.block_until_ready(out)
    assert jnp.allclose(out, ref, atol=1e-5, rtol=1e-5)

    # reduction='none' path (full (N, C) loss)
    out = focal_loss(x, target, gamma=2, alpha=alpha_list, reduction="none")
    jax.block_until_ready(out)
    ref = _focal_loss_ref(x, target, gamma=2, alpha=jnp.array(alpha_list), reduction="none")
    assert jnp.allclose(out, ref, atol=1e-5, rtol=1e-5)

    # multi-tile grid, ragged last block, non-128-multiple class axis:
    # N=50 with tile_rows=16 -> 4 grid steps (last block ragged); C=160 unpadded.
    N2, C2 = 50, 160
    x2 = jax.random.normal(k_x2, (N2, C2), dtype=jnp.float32)
    labels2 = jax.random.randint(k_lbl2, (N2,), 0, C2)
    target2 = jax.nn.one_hot(labels2, C2, dtype=jnp.float32)

    out = focal_loss(x2, target2, gamma=2, alpha=None, reduction="sum", tile_rows=16)
    jax.block_until_ready(out)
    ref = _focal_loss_ref(x2, target2, gamma=2, alpha=None, reduction="sum")
    assert jnp.allclose(out, ref, atol=1e-4, rtol=1e-5)

    # default tiling (auto tile_n, >=2 tiles rule), mean
    out = focal_loss(x2, target2, gamma=2, alpha=None, reduction="mean")
    jax.block_until_ready(out)
    ref = _focal_loss_ref(x2, target2, gamma=2, alpha=None, reduction="mean")
    assert jnp.allclose(out, ref, atol=1e-5, rtol=1e-5)

    out = focal_loss(x2, target2, gamma=2, alpha=None, reduction="none", tile_rows=16)
    jax.block_until_ready(out)
    ref = _focal_loss_ref(x2, target2, gamma=2, alpha=None, reduction="none")
    assert jnp.allclose(out, ref, atol=1e-5, rtol=1e-5)

    # labels fast path on the larger shape, sum
    out = focal_loss(x2, labels2, gamma=2, alpha=None, reduction="sum", tile_rows=16)
    jax.block_until_ready(out)
    ref = _focal_loss_ref(x2, target2, gamma=2, alpha=None, reduction="sum")
    assert jnp.allclose(out, ref, atol=1e-4, rtol=1e-5)

    print("KERNEL_OK")
</pallas_src>

<mosaic_0001>
module attributes {stable_mosaic.version = 11 : i64} {
  func.func @kernel(%arg0: i32, %arg1: memref<8x16xf32, #tpu.memory_space<vmem>>, %arg2: memref<8x16xf32, #tpu.memory_space<vmem>>, %arg3: memref<1x1x16xf32, #tpu.memory_space<vmem>>) attributes {dimension_semantics = [#tpu.dimension_semantics<parallel>], iteration_bounds = array<i64: 1>, scalar_prefetch = 0 : i64, scratch_operands = 0 : i64, tpu.core_type = #tpu.core_type<tc>, window_params = [{transform_indices = @transform_0, window_bounds = array<i64: 8, 16>}, {transform_indices = @transform_1, window_bounds = array<i64: 8, 16>}, {transform_indices = @transform_2, window_bounds = array<i64: 1, 1, 16>}]} {
    %c0 = arith.constant 0 : index
    %c0_0 = arith.constant 0 : index
    %0 = vector.load %arg1[%c0, %c0_0] : memref<8x16xf32, #tpu.memory_space<vmem>>, vector<8x16xf32>
    %c0_1 = arith.constant 0 : index
    %c0_2 = arith.constant 0 : index
    %1 = vector.load %arg2[%c0_1, %c0_2] : memref<8x16xf32, #tpu.memory_space<vmem>>, vector<8x16xf32>
    %cst = arith.constant dense<0xFF800000> : vector<8xf32>
    %2 = vector.multi_reduction <maximumf>, %0, %cst [1] : vector<8x16xf32> to vector<8xf32>
    %3 = vector.shape_cast %2 : vector<8xf32> to vector<8x1xf32>
    %4 = vector.broadcast %3 : vector<8x1xf32> to vector<8x16xf32>
    %5 = arith.subf %0, %4 : vector<8x16xf32>
    %6 = math.exp %5 : vector<8x16xf32>
    %cst_3 = arith.constant dense<0.000000e+00> : vector<8xf32>
    %7 = vector.multi_reduction <add>, %6, %cst_3 [1] : vector<8x16xf32> to vector<8xf32>
    %8 = vector.shape_cast %7 : vector<8xf32> to vector<8x1xf32>
    %9 = tpu.reciprocal %8 : vector<8x1xf32> -> vector<8x1xf32>
    %10 = vector.broadcast %9 : vector<8x1xf32> to vector<8x16xf32>
    %11 = arith.mulf %6, %10 : vector<8x16xf32>
    %12 = math.log %8 : vector<8x1xf32>
    %13 = vector.broadcast %12 : vector<8x1xf32> to vector<8x16xf32>
    %14 = arith.subf %5, %13 : vector<8x16xf32>
    %cst_4 = arith.constant 0.000000e+00 : f32
    %15 = vector.broadcast %cst_4 : f32 to vector<8x16xf32>
    %16 = arith.subf %15, %1 : vector<8x16xf32>
    %cst_5 = arith.constant 1.000000e+00 : f32
    %17 = vector.broadcast %cst_5 : f32 to vector<8x16xf32>
    %18 = arith.subf %17, %11 : vector<8x16xf32>
    %19 = arith.mulf %18, %18 : vector<8x16xf32>
    %20 = arith.mulf %16, %19 : vector<8x16xf32>
    %21 = arith.mulf %20, %14 : vector<8x16xf32>
    %cst_6 = arith.constant dense<0.000000e+00> : vector<16xf32>
    %22 = vector.multi_reduction <add>, %21, %cst_6 [0] : vector<8x16xf32> to vector<16xf32>
    %23 = vector.shape_cast %22 : vector<16xf32> to vector<1x16xf32>
    %24 = vector.shape_cast %23 : vector<1x16xf32> to vector<1x1x16xf32>
    %c0_7 = arith.constant 0 : index
    %c0_8 = arith.constant 0 : index
    %c0_9 = arith.constant 0 : index
    %25 = vector.load %arg3[%c0_7, %c0_8, %c0_9] : memref<1x1x16xf32, #tpu.memory_space<vmem>>, vector<1x1x16xf32>
    tpu.vector_store %arg3[%c0_7, %c0_8, %c0_9], %24 {strides = array<i32>} : memref<1x1x16xf32, #tpu.memory_space<vmem>>, vector<1x1x16xf32>,
    return
  }
  func.func @transform_0(%arg0: i32) -> (i32, i32) {
    %c0_i32 = arith.constant 0 : i32
    %c0_i32_0 = arith.constant 0 : i32
    return %arg0, %c0_i32 : i32, i32
  }
  func.func @transform_1(%arg0: i32) -> (i32, i32) {
    %c0_i32 = arith.constant 0 : i32
    %c0_i32_0 = arith.constant 0 : i32
    return %arg0, %c0_i32 : i32, i32
  }
  func.func @transform_2(%arg0: i32) -> (i32, i32, i32) {
    %c0_i32 = arith.constant 0 : i32
    %c0_i32_0 = arith.constant 0 : i32
    %c0_i32_1 = arith.constant 0 : i32
    return %arg0, %c0_i32, %c0_i32_0 : i32, i32, i32
  }
}

</mosaic_0001>

<bundles_post_ra>
// kernel: tpu_custom_call.1
= control target key start
LH: loop header
LB: loop body
LE: loop exit
PB: predicated region body
PF: predicated region fallthrough
CT: control target
= control target key end

     0   :  { %7 = vsyncpa [#allocation3], 0  ;;  %s221_s0 = inlined_call_operand.hbm [shape: f32[8,16], index: 0, kind: input, shape index: {}]   ;;  %s222_s1 = inlined_call_operand.hbm [shape: f32[8,16], index: 1, kind: input, shape index: {}]   ;;  %s223_s2 = inlined_call_operand.hbm [shape: f32[1,1,16], index: 2, kind: output, shape index: {}]  }
   0x1   :  { %8 = vsyncpa [#allocation6], 0 }
   0x2   :  { %9 = vsyncpa [#allocation4], 0  ;;  %s164_s9 = smov [#allocation2]   ;;  %s165_s11 = smov [#allocation5]  }
   0x3   :  { %s16_s10 = sshll.u32 %s164_s9, 4  ;;  %s26_s12 = sshll.u32 %s165_s11, 4  ;;  %s17_s10 = int_to_ptr.vmem [resolvable:$true] %s16_s10  ;;  %s27_s12 = int_to_ptr.vmem [resolvable:$true] %s26_s12 }
   0x4   :  { %s92_s15 = scalar_lea.hbm %s221_s0, 128 }
   0x5   :  { %p93_p0 = scmp.ne.s32.totalorder %s221_s0, %s92_s15  ;;  %p96_p1 = scmp.lt.u32.totalorder %s92_s15, %s221_s0 }
   0x7   :  { %p98_p2 = pnand %p96_p1, %p93_p0 }
   0x9   :  { %101 = shalt.err (!%p98_p2)
}
   0xa   :  { %s102_s20 = scalar_lea.vmem %s17_s10, 128  ;;  %p107_p4 = scmp.lt.s32.totalorder %s17_s10, %s17_s10 }
   0xb   :  { %p103_p3 = scmp.ne.s32.totalorder %s17_s10, %s102_s20  ;;  %p108_p5 = scmp.lt.s32.totalorder %s102_s20, %s102_s20 }
   0xd   :  { %p109_p6 = por %p108_p5, %p107_p4 }
   0xf   :  { %p110_p7 = pnand %p109_p6, %p103_p3 }
  0x11   :  { %113 = shalt.err (!%p110_p7)
}
  0x12   :  { %19 = dma.hbm_to_vmem [thread:$0]  %s221_s0, 128, %s17_s10, [#allocation3]  }
  0x13   :  { %s114_s25 = scalar_lea.hbm %s222_s1, 128 }
  0x14   :  { %p115_p8 = scmp.ne.s32.totalorder %s222_s1, %s114_s25  ;;  %p118_p9 = scmp.lt.u32.totalorder %s114_s25, %s222_s1 }
  0x16   :  { %p120_p10 = pnand %p118_p9, %p115_p8 }
  0x18   :  { %123 = shalt.err (!%p120_p10)
}
  0x19   :  { %s124_s30 = scalar_lea.vmem %s27_s12, 128  ;;  %p129_p12 = scmp.lt.s32.totalorder %s27_s12, %s27_s12 }
  0x1a   :  { %p125_p11 = scmp.ne.s32.totalorder %s27_s12, %s124_s30  ;;  %p130_p13 = scmp.lt.s32.totalorder %s124_s30, %s124_s30 }
  0x1c   :  { %p131_p0 = por %p130_p13, %p129_p12 }
  0x1e   :  { %p132_p1 = pnand %p131_p0, %p125_p11 }
  0x20   :  { %135 = shalt.err (!%p132_p1)
}
  0x21   :  { %29 = dma.hbm_to_vmem [thread:$0]  %s222_s1, 128, %s27_s12, [#allocation6]  }
  0x22   :  { %158 = dma.done.wait [#allocation3], 128  }
  0x23   :  { %159 = vsyncadd [#allocation3], 4294967168 }
  0x24   :  { %160 = dma.done.wait [#allocation6], 128  }
  0x25   :  { %161 = vsyncadd [#allocation6], 4294967168  ;;  %vm38_vm0 = vcmask 130048   ;;  %v36_v0 = vld [vmem:[#allocation2] sm:$0xff]  ;;  %v37_v9 = vld [vmem:[#allocation5] sm:$0xff]  ;;  %s166_s1 = smov [#allocation7]  }
  0x26   :  { %v39_v1 = vsel %vm38_vm0, %v36_v0, -inf  ;;  %v53_v12 = vsub.f32 0.0, %v37_v9  ;;  %s73_s4 = sshll.u32 %s166_s1, 4  ;;  %vm65_vm1 = vcmask 122880   ;;  %s74_s4 = int_to_ptr.vmem [resolvable:$true] %s73_s4 }
  0x27   :  { %40 = vmax.xlane.f32.xlu0 %v39_v1  ;;  %s136_s5 = scalar_lea.vmem %s74_s4, 16  ;;  %s140_s6 = scalar_lea.vmem %s74_s4, 32 }
  0x28   :  { %p137_p2 = scmp.ne.s32.totalorder %s74_s4, %s136_s5  ;;  %p141_p3 = scmp.lt.s32.totalorder %s74_s4, %s74_s4 }
  0x29   :  { %p142_p4 = scmp.lt.s32.totalorder %s140_s6, %s136_s5 }
  0x2b   :  { %p143_p5 = por %p142_p4, %p141_p3 }
  0x2d   :  { %p144_p6 = pnand %p143_p5, %p137_p2 }
  0xb4   :  { %v41_v2 = vpop.xlane.xlu0 %40 }
  0xb5   :  { %v42_v3 = vsub.f32 %v36_v0, %v41_v2 }
  0xb7   :  { %v43_v4 = vmul.f32 1.442695, %v42_v3 }
  0xb9   :  { %86 = vpow2.f32 %v43_v4 }
  0xc3   :  { %v87_v5 = vpop.eup %86 }
  0xc4   :  { %v45_v6 = vsel %vm38_vm0, %v87_v5, 0.0 }
  0xc5   :  { %46 = vadd.xlane.f32.xlu0 %v45_v6 }
 0x152   :  { %v47_v7 = vpop.xlane.xlu0 %46 }
 0x153   :  { %88 = vrcp.f32 %v47_v7 }
 0x154   :  { %90 = vlog2.f32 %v47_v7 }
 0x15d   :  { %v89_v8 = vpop.eup %88 }
 0x15e   :  { %v91_v10 = vpop.eup %90  ;;  %v49_v11 = vmul.f32 %v89_v8, %v87_v5 }
 0x15f   :  { %v51_v13 = vmul.f32 0.6931472, %v91_v10 }
 0x160   :  { %v54_v14 = vsub.f32 1.0, %v49_v11 }
 0x161   :  { %v52_v16 = vsub.f32 %v42_v3, %v51_v13 }
 0x162   :  { %v55_v15 = vmul.f32 %v54_v14, %v54_v14 }
 0x164   :  { %v56_v17 = vmul.f32 %v55_v15, %v53_v12 }
 0x166   :  { %v57_v18 = vmul.f32 %v56_v17, %v52_v16 }
 0x168   :  { %v58_v19 = vsel %vm38_vm0, %v57_v18, 0.0 }
 0x169   :  { %v59_v20 = vrot.slane %v58_v19, 4 }
 0x16b   :  { %v60_v21 = vadd.f32 %v59_v20, %v58_v19 }
 0x16d   :  { %v61_v22 = vrot.slane %v60_v21, 2 }
 0x16f   :  { %v62_v23 = vadd.f32 %v61_v22, %v60_v21 }
 0x171   :  { %v63_v24 = vrot.slane %v62_v23, 1 }
 0x173   :  { %v64_v25 = vadd.f32 %v63_v24, %v62_v23 }
 0x175   :  { %66 = vst.msk [vmem:[#allocation7] sm:$0x1] %vm65_vm1, %v64_v25 }
 0x176   :  { %147 = shalt.err (!%p144_p6)
}
 0x177   :  { %s148_s9 = scalar_lea.hbm %s223_s2, 16 }
 0x178   :  { %p149_p7 = scmp.ne.s32.totalorder %s223_s2, %s148_s9  ;;  %p152_p8 = scmp.lt.u32.totalorder %s148_s9, %s223_s2 }
 0x17a   :  { %p154_p9 = pnand %p152_p8, %p149_p7 }
 0x17c   :  { %157 = shalt.err (!%p154_p9)
}
 0x17d   :  { %76 = dma.vmem_to_hbm [thread:$0]  %s74_s4, 16, %s223_s2, [#allocation4]  }
 0x17e   :  { %162 = dma.done.wait [#allocation4], 16  }
 0x17f   :  { %163 = vsyncadd [#allocation4], 4294967280 }
 0x180   :  { %80 = vsyncpa [#allocation3], 1 }
 0x181   :  { %81 = vsyncpa [#allocation6], 1 }
 0x182   :  { %82 = vsyncpa [#allocation4], 1 }

</bundles_post_ra>
